<compile_context>
chip_gen: v7x
topology: tpu7x:2x2x1
jax: 0.10.0
libtpu: 0.0.40
codegen_flags: <defaults>
</compile_context>

<pallas_src>
import functools

import jax
import jax.numpy as jnp
from jax.experimental import pallas as pl
from jax.experimental.pallas import tpu as pltpu

LANES = 128  # vreg lane width: keep the last dim lane-dense


def _actor_loss_kernel(adv_ref, logp_ref, out_ref, *, tile_rows,
                       steps_per_slice, n):
    c = pl.program_id(0)   # parallel slice (TensorCore) axis
    i = pl.program_id(1)   # reduction axis (output block resident across it)

    @pl.when(i == 0)
    def _init():
        out_ref[...] = jnp.zeros_like(out_ref)

    # Load native dtype, upcast to f32 on the VPU, multiply (negation is
    # folded into the final scale in the wrapper).
    a = adv_ref[...].astype(jnp.float32)
    l = logp_ref[...].astype(jnp.float32)
    prod = a * l

    # Mask everything past the true element count n: covers the ragged last
    # row-block (unspecified OOB values) and fully-duplicated clamped blocks.
    row_start = (c * steps_per_slice + i) * tile_rows
    row_iota = jax.lax.broadcasted_iota(jnp.int32, (tile_rows, LANES), 0)
    lane_iota = jax.lax.broadcasted_iota(jnp.int32, (tile_rows, LANES), 1)
    flat_idx = (row_start + row_iota) * LANES + lane_iota
    prod = jnp.where(flat_idx < n, prod, 0.0)

    # (tile_rows,128) -> (tile_rows//8, 8, 128); summing the leading axis is
    # pure vreg-wise VALU adds into the (8,128) resident output block.
    out_ref[...] += prod.reshape(tile_rows // 8, 8, LANES).sum(axis=0)


def actor_loss(advantages, log_prob, *, max_tile_rows=4096, num_slices=2):
    """Pallas TPU implementation of (-advantages * log_prob).mean().

    advantages / log_prob: arrays of identical shape (any rank, any float
    dtype). Returns a scalar f32.
    """
    assert advantages.shape == log_prob.shape, "shapes must match"
    n = advantages.size
    adv = advantages.reshape(-1)
    lp = log_prob.reshape(-1)

    # Lane-dense 2D view.  Reshape of a contiguous flat array is free; padding
    # (an extra HBM pass) only happens in the uncommon n % 128 != 0 case and
    # only by < 128 elements (which are masked in-kernel anyway).
    if n % LANES != 0:
        pad = LANES - n % LANES
        adv = jnp.pad(adv, (0, pad))
        lp = jnp.pad(lp, (0, pad))
    rows = adv.size // LANES
    adv = adv.reshape(rows, LANES)
    lp = lp.reshape(rows, LANES)

    # Tile: multiple of 8 rows (sublane tiling), large enough (~2 MiB / f32
    # input block by default) to amortize per-grid-step overhead, but never
    # larger than the array itself.
    tile_rows = min(max_tile_rows, -(-rows // 8) * 8)
    tile_rows = max(8, (tile_rows // 8) * 8)
    total_blocks = pl.cdiv(rows, tile_rows)

    # Parallel slices (2 TensorCores on v7x; serializes harmlessly elsewhere).
    num_slices = max(1, min(num_slices, total_blocks))
    steps_per_slice = pl.cdiv(total_blocks, num_slices)

    def in_index_map(c, i):
        blk = c * steps_per_slice + i
        # Clamp trailing duplicate blocks so the DMA stays in bounds; their
        # contribution is zeroed by the in-kernel flat-index mask.
        return (jnp.minimum(blk, total_blocks - 1), 0)

    kernel = functools.partial(
        _actor_loss_kernel,
        tile_rows=tile_rows,
        steps_per_slice=steps_per_slice,
        n=n,
    )

    bytes_accessed = (adv.size * adv.dtype.itemsize
                      + lp.size * lp.dtype.itemsize
                      + num_slices * 8 * LANES * 4)

    partials = pl.pallas_call(
        kernel,
        out_shape=jax.ShapeDtypeStruct((num_slices * 8, LANES), jnp.float32),
        grid_spec=pltpu.PrefetchScalarGridSpec(
            num_scalar_prefetch=0,
            grid=(num_slices, steps_per_slice),
            in_specs=[
                pl.BlockSpec((tile_rows, LANES), in_index_map),
                pl.BlockSpec((tile_rows, LANES), in_index_map),
            ],
            out_specs=pl.BlockSpec((8, LANES), lambda c, i: (c, 0)),
        ),
        compiler_params=pltpu.CompilerParams(
            dimension_semantics=("parallel", "arbitrary"),
        ),
        cost_estimate=pl.CostEstimate(
            flops=2 * n, transcendentals=0, bytes_accessed=bytes_accessed),
    )(adv, lp)

    # Tiny (num_slices*8, 128) cross-sublane/cross-lane reduce; negation is
    # folded into the -1/n scale; mean divides by the true element count.
    return jnp.sum(partials) * (-1.0 / n)


def reference_actor_loss(advantages, log_prob):
    """Pure-JAX reference of the PyTorch module (f32 accumulation)."""
    return jnp.mean(-advantages.astype(jnp.float32)
                    * log_prob.astype(jnp.float32))


if __name__ == "__main__":
    key = jax.random.PRNGKey(0)
    k1, k2, k3, k4 = jax.random.split(key, 4)

    # Case 1: f32 flat batch of 2560 (rows=20).  A small tile (8 rows) forces
    # the multi-step accumulator, both parallel slices, a partial boundary
    # block and a clamped duplicate block.
    adv1 = jax.random.normal(k1, (2560,), jnp.float32)
    lp1 = jnp.log(jax.random.uniform(k2, (2560,), jnp.float32, 1e-3, 1.0))
    out1 = jax.block_until_ready(actor_loss(adv1, lp1, max_tile_rows=8))
    ref1 = reference_actor_loss(adv1, lp1)
    assert out1.shape == ()
    assert bool(jnp.allclose(out1, ref1, rtol=1e-5, atol=1e-5)), (out1, ref1)

    # Case 2: bf16 inputs, ragged length (batch=10, seq=200 -> n=2000, not a
    # multiple of 128), default big tile, single-step path, in-kernel upcast.
    adv2 = jax.random.normal(k3, (10, 200), jnp.bfloat16)
    lp2 = jnp.log(jax.random.uniform(k4, (10, 200), jnp.float32,
                                     1e-3, 1.0)).astype(jnp.bfloat16)
    out2 = jax.block_until_ready(actor_loss(adv2, lp2))
    ref2 = reference_actor_loss(adv2, lp2)
    assert out2.shape == ()
    assert bool(jnp.allclose(out2, ref2, rtol=1e-5, atol=1e-5)), (out2, ref2)

    print("KERNEL_OK")
</pallas_src>

<mosaic_0001>
module attributes {stable_mosaic.version = 11 : i64} {
  func.func @_actor_loss_kernel(%arg0: i32, %arg1: i32, %arg2: memref<8x128xf32, #tpu.memory_space<vmem>>, %arg3: memref<8x128xf32, #tpu.memory_space<vmem>>, %arg4: memref<8x128xf32, #tpu.memory_space<vmem>>) attributes {dimension_semantics = [#tpu.dimension_semantics<parallel>, #tpu.dimension_semantics<arbitrary>], iteration_bounds = array<i64: 2, 2>, scalar_prefetch = 0 : i64, scratch_operands = 0 : i64, tpu.core_type = #tpu.core_type<tc>, window_params = [{transform_indices = @transform_0, window_bounds = array<i64: 8, 128>}, {transform_indices = @transform_1, window_bounds = array<i64: 8, 128>}, {transform_indices = @transform_2, window_bounds = array<i64: 8, 128>}]} {
    %c0_i32 = arith.constant 0 : i32
    %0 = arith.cmpi eq, %arg1, %c0_i32 : i32
    %1 = arith.extui %0 : i1 to i32
    %c0_i32_0 = arith.constant 0 : i32
    %2 = arith.cmpi ne, %1, %c0_i32_0 : i32
    scf.if %2 {
      %cst_9 = arith.constant 0.000000e+00 : f32
      %25 = vector.broadcast %cst_9 : f32 to vector<8x128xf32>
      %c0_10 = arith.constant 0 : index
      %c0_11 = arith.constant 0 : index
      %26 = vector.load %arg4[%c0_10, %c0_11] : memref<8x128xf32, #tpu.memory_space<vmem>>, vector<8x128xf32>
      tpu.vector_store %arg4[%c0_10, %c0_11], %25 {strides = array<i32>} : memref<8x128xf32, #tpu.memory_space<vmem>>, vector<8x128xf32>,
    } else {
    }
    %c0 = arith.constant 0 : index
    %c0_1 = arith.constant 0 : index
    %3 = vector.load %arg2[%c0, %c0_1] : memref<8x128xf32, #tpu.memory_space<vmem>>, vector<8x128xf32>
    %c0_2 = arith.constant 0 : index
    %c0_3 = arith.constant 0 : index
    %4 = vector.load %arg3[%c0_2, %c0_3] : memref<8x128xf32, #tpu.memory_space<vmem>>, vector<8x128xf32>
    %5 = arith.mulf %3, %4 : vector<8x128xf32>
    %c2_i32 = arith.constant 2 : i32
    %6 = arith.muli %arg0, %c2_i32 : i32
    %7 = arith.addi %6, %arg1 : i32
    %c8_i32 = arith.constant 8 : i32
    %8 = arith.muli %7, %c8_i32 : i32
    %9 = tpu.iota {dimensions = array<i32: 0>} : vector<8x128xi32>
    %10 = tpu.iota {dimensions = array<i32: 1>} : vector<8x128xi32>
    %11 = vector.broadcast %8 : i32 to vector<8x128xi32>
    %12 = arith.addi %11, %9 : vector<8x128xi32>
    %c128_i32 = arith.constant 128 : i32
    %13 = vector.broadcast %c128_i32 : i32 to vector<8x128xi32>
    %14 = arith.muli %12, %13 : vector<8x128xi32>
    %15 = arith.addi %14, %10 : vector<8x128xi32>
    %c2560_i32 = arith.constant 2560 : i32
    %16 = vector.broadcast %c2560_i32 : i32 to vector<8x128xi32>
    %17 = arith.cmpi slt, %15, %16 : vector<8x128xi32>
    %cst = arith.constant 0.000000e+00 : f32
    %18 = vector.broadcast %cst : f32 to vector<8x128xf32>
    %19 = arith.select %17, %5, %18 : vector<8x128xi1>, vector<8x128xf32>
    %c0_4 = arith.constant 0 : index
    %c0_5 = arith.constant 0 : index
    %20 = vector.load %arg4[%c0_4, %c0_5] : memref<8x128xf32, #tpu.memory_space<vmem>>, vector<8x128xf32>
    %21 = vector.shape_cast %19 : vector<8x128xf32> to vector<1x8x128xf32>
    %cst_6 = arith.constant dense<0.000000e+00> : vector<8x128xf32>
    %22 = vector.multi_reduction <add>, %21, %cst_6 [0] : vector<1x8x128xf32> to vector<8x128xf32>
    %23 = arith.addf %20, %22 : vector<8x128xf32>
    %c0_7 = arith.constant 0 : index
    %c0_8 = arith.constant 0 : index
    %24 = vector.load %arg4[%c0_7, %c0_8] : memref<8x128xf32, #tpu.memory_space<vmem>>, vector<8x128xf32>
    tpu.vector_store %arg4[%c0_7, %c0_8], %23 {strides = array<i32>} : memref<8x128xf32, #tpu.memory_space<vmem>>, vector<8x128xf32>,
    return
  }
  func.func @transform_0(%arg0: i32, %arg1: i32) -> (i32, i32) {
    %c2_i32 = arith.constant 2 : i32
    %0 = arith.muli %arg0, %c2_i32 : i32
    %1 = arith.addi %0, %arg1 : i32
    %c2_i32_0 = arith.constant 2 : i32
    %2 = arith.minsi %1, %c2_i32_0 : i32
    %c0_i32 = arith.constant 0 : i32
    %c0_i32_1 = arith.constant 0 : i32
    return %2, %c0_i32 : i32, i32
  }
  func.func @transform_1(%arg0: i32, %arg1: i32) -> (i32, i32) {
    %c2_i32 = arith.constant 2 : i32
    %0 = arith.muli %arg0, %c2_i32 : i32
    %1 = arith.addi %0, %arg1 : i32
    %c2_i32_0 = arith.constant 2 : i32
    %2 = arith.minsi %1, %c2_i32_0 : i32
    %c0_i32 = arith.constant 0 : i32
    %c0_i32_1 = arith.constant 0 : i32
    return %2, %c0_i32 : i32, i32
  }
  func.func @transform_2(%arg0: i32, %arg1: i32) -> (i32, i32) {
    %c0_i32 = arith.constant 0 : i32
    %c0_i32_0 = arith.constant 0 : i32
    return %arg0, %c0_i32 : i32, i32
  }
}

</mosaic_0001>

<bundles_post_ra>
// kernel: tpu_custom_call.1
= control target key start
LH: loop header
LB: loop body
LE: loop exit
PB: predicated region body
PF: predicated region fallthrough
CT: control target
= control target key end

     0   :  { %s1008_s0 = inlined_call_operand.hbm [shape: f32[20,128], index: 0, kind: input, shape index: {}]   ;;  %s1009_s1 = inlined_call_operand.hbm [shape: f32[20,128], index: 1, kind: input, shape index: {}]   ;;  %s1010_s2 = inlined_call_operand.hbm [shape: f32[16,128], index: 2, kind: output, shape index: {}]  }
   0x1   :  { %1017 = sst [smem:[#allocation13_spill]] %s1008_s0 }
   0x2   :  { %7 = vsyncpa [#allocation3], 0 }
   0x3   :  { %9 = vsyncpa [#allocation3 + $0x1], 0 }
   0x4   :  { %10 = vsyncpa [#allocation6], 0 }
   0x5   :  { %12 = vsyncpa [#allocation6 + $0x1], 0 }
   0x6   :  { %13 = vsyncpa [#allocation4], 0 }
   0x7   :  { %15 = vsyncpa [#allocation4 + $0x1], 0  ;;  %s723_s9 = smov 0   ;;  %s725_s10 = smov 0  }
   0x8   :  { %s727_s11 = smov 0   ;;  %s729_s12 = smov 0  }
   0x9   :  { %s731_s13 = smov 0   ;;  %s733_s14 = smov 0  }
   0xa   :  { %s735_s15 = smov 0   ;;  %s737_s16 = smov 0  }
   0xb   :  { %s739_s17 = smov 0   ;;  %s741_s18 = smov 0  }
   0xc   :  { %s743_s19 = smov 0  }
   0xd LB: > { %s383_s20 = sadd.s32 4294967295, %s702_s19   ;;  %s384_s21 = sadd.s32 4294967294, %s702_s19   ;;  %s702_s19 = sphi %s743_s19, %s21_s19   ;;  %s698_s18 = sphi %s741_s18, %s1046_s18   ;;  %s694_s17 = sphi %s739_s17, %s1045_s17   ;;  %s690_s16 = sphi %s737_s16, %s1044_s16   ;;  %s686_s15 = sphi %s735_s15, %s1043_s15   ;;  %s682_s14 = sphi %s733_s14, %s1042_s14   ;;  %s678_s13 = sphi %s731_s13, %s1041_s13   ;;  %s674_s12 = sphi %s729_s12, %s1040_s12   ;;  %s670_s11 = sphi %s727_s11, %s1039_s11   ;;  %s666_s10 = sphi %s725_s10, %s1038_s10   ;;  %s662_s9 = sphi %s723_s9, %s1037_s9  }
   0xe   : > { %s30_s22 = sadd.s32 1, %s694_s17  ;;  %s33_s23 = sadd.s32 1, %s698_s18 }
   0xf   : > { %p31_p0 = scmp.ge.s32.totalorder %s30_s22, 2  ;;  %s385_s24 = sshll.u32 %s698_s18, 1 }
  0x10   : > { %s38_s25 = sadd.s32 %s694_s17, %s385_s24  ;;  %s48_s26 = sadd.s32 1, %s682_s14 }
  0x11   : > { %s1048_s22 = smov (%p31_p0, %s30_s22), 0  ;;  %s1050_s23 = smov (!%p31_p0, %s33_s23), %s698_s18 }
  0x12   : > { %1018 = sst [smem:[#allocation11_spill]] %s1048_s22  ;;  %p39_p1 = scmp.lt.s32.totalorder %s38_s25, 2 }
  0x13   : > { %p55_p2 = scmp.ne.s32.totalorder %s682_s14, %s678_s13  ;;  %p35_p3 = scmp.ge.s32.totalorder %s1050_s23, 2 }
  0x14   : > { %p56_p4 = scmp.eq.s32.totalorder %s702_s19, 0  ;;  %s1052_s25 = smov (!%p39_p1, %s38_s25), 2 }
  0x15   : > { %s1054_s23 = smov (%p35_p3, %s1050_s23), 0  ;;  %p61_p6 = scmp.ne.s32.totalorder %s678_s13, %s674_s12 }
  0x16   : > { %1019 = sst [smem:[#allocation12_spill]] %s1054_s23  ;;  %p795_p5 = por %p56_p4, %p55_p2 }
  0x17   : > { %s386_s28 = sshll.u32 %s1054_s23, 1  ;;  %p62_p7 = scmp.eq.s32.totalorder %s383_s20, 0 }
  0x18   : > { %s42_s29 = sadd.s32 %s386_s28, %s1048_s22  ;;  %s105_s30 = ssub.s32 %s698_s18, %s1054_s23 }
  0x19   : > { %p43_p8 = scmp.lt.s32.totalorder %s42_s29, 2  ;;  %p807_p9 = por %p62_p7, %p61_p6 }
  0x1a   : > { %p106_p10 = scmp.eq.s32.totalorder %s105_s30, 0  ;;  %s108_s4 = sadd.s32 1, %s670_s11 }
  0x1b   : > { %s1021_s3 = scalar_select %p807_p9, 1, 0 }
  0x1c   : > { %s1056_s29 = smov (!%p43_p8, %s42_s29), 2  ;;  %p118_p11 = scmp.ne.s32.totalorder %s670_s11, %s666_s10 }
  0x1d   : > { %s813_s5 = scalar_select %p106_p10, %s670_s11, %s108_s4  }
  0x1e   : > { %s45_s6 = ssub.s32 %s1052_s25, %s1056_s29  ;;  %p119_p13 = scmp.eq.s32.totalorder %s383_s20, 3 }
  0x1f   : > { %p46_p12 = scmp.eq.s32.totalorder %s45_s6, 0  ;;  %p124_p0 = scmp.ne.s32.totalorder %s666_s10, %s662_s9 }
  0x20   : > { %p125_p1 = scmp.eq.s32.totalorder %s384_s21, 3  ;;  %p827_p2 = por %p119_p13, %p118_p11 }
  0x21   : > { %s825_s7 = scalar_select %p46_p12, %s682_s14, %s48_s26  }
  0x22   : > { %s1022_s8 = scalar_select %p827_p2, 1, 0 }
  0x23   : > { %p831_p3 = por %p125_p1, %p124_p0  ;;  %p425_p4 = scmp.lt.s32.totalorder %s702_s19, 4 }
  0x24   : > { %s837_s24 = sand.u32 1, %s682_s14   ;;  %s1012_s20 = sshll.u32 %s1052_s25, 7 }
  0x25   : > { %s1023_s12 = scalar_select %p831_p3, 1, 0 }
  0x26   : > { %s1011_s28 = sshll.u32 %s837_s24, 3  ;;  %s1024_s0 = sld [smem:[#allocation13_spill]] }
  0x27   : > { %s149_s30 = scalar_lea.vmem [#allocation2], %s1011_s28  ;;  %p852_p6 = pnand %p425_p4, %p795_p5 }
  0x28   : > { %s160_s4 = sshll.u32 %s149_s30, 4  ;;  %s146_s21 = scalar_lea.sflag [#allocation3], %s837_s24  ;;  %s856_s4 = int_to_ptr.vmem [resolvable:$true] %s160_s4 }
  0x29   : > { %p518_p11 = pneg %p852_p6 }
  0x2c   : > { %s846_s29 = scalar_lea.hbm %s1024_s0, %s1012_s20  ;;  %s521_s28 = scalar_lea.hbm %s1024_s0, 384 }
  0x2d   : > { %s516_s26 = scalar_lea.hbm %s846_s29, 128  ;;  %p522_p5 = scmp.lt.u32.totalorder %s846_s29, %s1024_s0 }
  0x2e   : > { %p517_p10 = scmp.ne.s32.totalorder %s846_s29, %s516_s26  ;;  %p523_p0 = scmp.lt.u32.totalorder %s521_s28, %s516_s26 }
  0x2f   : > { %p525_p4 = scmp.lt.u32.totalorder %s516_s26, %s846_s29 }
  0x30   : > { %p519_p12 = pnand %p518_p11, %p517_p10  ;;  %p524_p1 = por %p523_p0, %p522_p5 }
  0x32   : > { %p520_p13 = pneg %p519_p12  ;;  %p526_p7 = por %p525_p4, %p524_p1 }
  0x34   : > { %p527_p8 = pnand %p526_p7, %p520_p13 }
  0x36   : > { %530 = shalt.err (!%p527_p8)
}
  0x37   : > { %s531_s22 = scalar_lea.vmem %s856_s4, 128  ;;  %s704_s27 = smov [#allocation2]  }
  0x38   : > { %p532_p10 = scmp.ne.s32.totalorder %s856_s4, %s531_s22  ;;  %s536_s30 = sshll.u32 %s704_s27, 4  ;;  %s537_s30 = int_to_ptr.vmem [resolvable:$false] %s536_s30 }
  0x39   : > { %s538_s23 = scalar_lea.vmem %s537_s30, 256  ;;  %p539_p2 = scmp.lt.s32.totalorder %s856_s4, %s537_s30 }
  0x3a   : > { %p534_p12 = pnand %p532_p10, %p518_p11  ;;  %p540_p5 = scmp.lt.s32.totalorder %s538_s23, %s531_s22 }
  0x3c   : > { %p535_p3 = pneg %p534_p12  ;;  %p541_p0 = por %p540_p5, %p539_p2 }
  0x3e   : > { %p542_p1 = pnand %p541_p0, %p535_p3 }
  0x40   : > { %545 = shalt.err (!%p542_p1)
}
  0x41   : > { %417 = dma.hbm_to_vmem [thread:$0]  (!%p852_p6), %s846_s29, 128, %s856_s4, %s146_s21  }
  0x42   : > { %p1026_p7 = scmp.lt.s32.totalorder %s702_s19, 5  ;;  %p1027_p8 = scmp.ge.s32.totalorder %s702_s19, 1 }
  0x43   : > { %s1029_s22 = sshll.u32 %s1052_s25, 7  ;;  %s1030_s30 = sshll.u32 %s837_s24, 3 }
  0x44   : > { %p890_p13 = pnand %p1027_p8, %p1026_p7  ;;  %s899_s27 = scalar_lea.hbm %s1009_s1, %s1029_s22 }
  0x45   : > { %s171_s23 = scalar_lea.vmem [#allocation5], %s1030_s30  ;;  %s168_s29 = scalar_lea.sflag [#allocation6], %s837_s24 }
  0x46   : > { %s1028_s20 = scalar_select %p890_p13, 1, 0 }
  0x47   : > { %s182_s0 = sshll.u32 %s171_s23, 4  ;;  %s546_s4 = scalar_lea.hbm %s899_s27, 128  ;;  %s183_s0 = int_to_ptr.vmem [resolvable:$true] %s182_s0 }
  0x48   : > { %p547_p2 = scmp.ne.s32.totalorder %s899_s27, %s546_s4  ;;  %s551_s22 = scalar_lea.hbm %s1009_s1, 384 }
  0x49   : > { %p552_p10 = scmp.lt.u32.totalorder %s899_s27, %s1009_s1  ;;  %p553_p12 = scmp.lt.u32.totalorder %s551_s22, %s546_s4 }
  0x4a   : > { %p549_p3 = pnand %p547_p2, %p518_p11  ;;  %p555_p0 = scmp.lt.u32.totalorder %s546_s4, %s899_s27 }
  0x4b   : > { %p554_p5 = por %p553_p12, %p552_p10 }
  0x4c   : > { %p550_p4 = pneg %p549_p3 }
  0x4d   : > { %p556_p1 = por %p555_p0, %p554_p5 }
  0x4f   : > { %p557_p7 = pnand %p556_p1, %p550_p4 }
  0x51   : > { %560 = shalt.err (!%p557_p7)
}
  0x52   : > { %s561_s24 = scalar_lea.vmem %s183_s0, 128  ;;  %s705_s30 = smov [#allocation5]  }
  0x53   : > { %p562_p8 = scmp.ne.s32.totalorder %s183_s0, %s561_s24  ;;  %s566_s23 = sshll.u32 %s705_s30, 4  ;;  %s567_s23 = int_to_ptr.vmem [resolvable:$false] %s566_s23 }
  0x54   : > { %s568_s25 = scalar_lea.vmem %s567_s23, 256  ;;  %p569_p9 = scmp.lt.s32.totalorder %s183_s0, %s567_s23 }
  0x55   : > { %p564_p2 = pnand %p562_p8, %p518_p11  ;;  %p570_p13 = scmp.lt.s32.totalorder %s568_s25, %s561_s24 }
  0x57   : > { %p565_p3 = pneg %p564_p2  ;;  %p571_p10 = por %p570_p13, %p569_p9 }
  0x59   : > { %p572_p12 = pnand %p571_p10, %p565_p3 }
  0x5b   : > { %575 = shalt.err (!%p572_p12)
}
  0x5c   : > { %420 = dma.hbm_to_vmem [thread:$0]  (!%p852_p6), %s899_s27, 128, %s183_s0, %s168_s29  }
  0x5d   : > { %p1031_p4 = scmp.ne.s32.totalorder %s1028_s20, 0 }
  0x5e   : > { %s193_s4 = sand.u32 (!%p1031_p4), 1, %s678_s13   ;;  %p1032_p11 = scmp.ne.s32.totalorder (!%p1031_p4), %s1021_s3, 0 }
  0x5f   : > { %191 = sbr.rel (%p1031_p4) target bundleno = 142 (0x8e), region = 28  ;;  %s398_s21 = sshll.u32 (!%p1031_p4), %s193_s4, 3 }
  0x60   : > { %s194_s22 = scalar_lea.sflag (!%p1031_p4), [#allocation3], %s193_s4  ;;  %s197_s28 = scalar_lea.vmem (!%p1031_p4), [#allocation2], %s398_s21 }
  0x66   : > { %649 = dma.done.wait (%p1032_p11), %s194_s22, 128  }
  0x67   : > { %651 = vsyncadd (%p1032_p11), %s194_s22, 4294967168  ;;  %s203_s26 = scalar_lea.sflag [#allocation6], %s193_s4  ;;  %s206_s24 = scalar_lea.vmem [#allocation5], %s398_s21 }
  0x68   : > { %653 = dma.done.wait (%p1032_p11), %s203_s26, 128  }
  0x69   : > { %655 = vsyncadd (%p1032_p11), %s203_s26, 4294967168  ;;  %s229_s0 = sand.u32 1, %s666_s10   ;;  %p401_p9 = scmp.ne.s32.totalorder %s686_s15, 0 }
  0x6a   : > { %s400_s6 = sshll.u32 %s229_s0, 3  ;;  %v706_v0 = vmov (!%p401_p9), 0.0  }
  0x6b   : > { %s231_s20 = scalar_lea.vmem [#allocation7], %s400_s6  ;;  %243 = sbr.rel (%p401_p9) target bundleno = 114 (0x72), region = 40 }
  0x6c   : > { %244 = vst [vmem:[%s231_s20] sm:$0xff] (!%p401_p9), %v706_v0 }
  0x72 PF: > { %s402_s27 = sshll.u32 %s690_s16, 1  ;;  %v251_v1 = vlaneseq  ;;  %v245_v4 = vld [vmem:[%s197_s28] sm:$0xff]  ;;  %v246_v5 = vld [vmem:[%s206_s24] sm:$0xff]  ;;  %s405_s30 = sshll.u32 %s690_s16, 7 }
  0x73   : > { %s249_s29 = sadd.s32 %s686_s15, %s402_s27  ;;  %v247_v9 = vmul.f32 %v246_v5, %v245_v4  ;;  %v261_v11 = vld [vmem:[%s231_s20] sm:$0xff]  ;;  %s279_s23 = sshll.u32 %s231_s20, 4  ;;  %s946_s23 = int_to_ptr.vmem [resolvable:$true] %s279_s23 }
  0x74   : > { %s403_s3 = sshll.u32 %s249_s29, 3  ;;  %v252_v2 = vshrl.u32 %v251_v1, 7  ;;  %v254_v6 = vand.u32 127, %v251_v1  ;;  %s944_s4 = scalar_lea.hbm %s1010_s2, %s405_s30 }
  0x75   : > { %v255_v3 = vstv %s403_s3  ;;  %s266_s21 = scalar_lea.sflag [#allocation4], %s229_s0  ;;  %s576_s22 = scalar_lea.vmem %s946_s23, 128 }
  0x76   : > { %v256_v7 = vadd.s32 %v255_v3, %v252_v2  ;;  %p577_p6 = scmp.ne.s32.totalorder %s946_s23, %s576_s22  ;;  %p1033_p13 = scmp.ne.s32.totalorder %s1022_s8, 0 }
  0x77   : > { %s707_s16 = smov [#allocation7]  }
  0x78   : > { %v257_v8 = vmul.u32 128, %v256_v7  ;;  %p578_p5 = pnand %p577_p6, %p1033_p13  ;;  %s580_s28 = sshll.u32 %s707_s16, 4  ;;  %s581_s28 = int_to_ptr.vmem [resolvable:$false] %s580_s28 }
  0x79   : > { %s582_s26 = scalar_lea.vmem %s581_s28, 256  ;;  %p583_p1 = scmp.lt.s32.totalorder %s946_s23, %s581_s28 }
  0x7a   : > { %v258_v10 = vadd.s32 %v257_v8, %v254_v6  ;;  %p579_p0 = pneg %p578_p5  ;;  %p584_p7 = scmp.lt.s32.totalorder %s582_s26, %s576_s22 }
  0x7c   : > { %vm259_vm0 = vcmp.lt.s32.totalorder %v258_v10, 2560  ;;  %p585_p8 = por %p584_p7, %p583_p1 }
  0x7d   : > { %v260_v12 = vsel %vm259_vm0, %v247_v9, 0.0 }
  0x7e   : > { %v263_v13 = vadd.f32 %v261_v11, %v260_v12  ;;  %p586_p2 = pnand %p585_p8, %p579_p0 }
  0x80   : > { %264 = vst [vmem:[%s231_s20] sm:$0xff] %v263_v13 }
  0x81   : > { %589 = shalt.err (!%p586_p2)
}
  0x82   : > { %s590_s24 = scalar_lea.hbm %s944_s4, 128  ;;  %s594_s20 = scalar_lea.hbm %s1010_s2, 256 }
  0x83   : > { %p591_p3 = scmp.ne.s32.totalorder %s944_s4, %s590_s24  ;;  %p595_p4 = scmp.lt.u32.totalorder %s944_s4, %s1010_s2 }
  0x84   : > { %p596_p11 = scmp.lt.u32.totalorder %s594_s20, %s590_s24  ;;  %p598_p6 = scmp.lt.u32.totalorder %s590_s24, %s944_s4 }
  0x85   : > { %p592_p10 = pnand %p591_p3, %p1033_p13 }
  0x86   : > { %p597_p9 = por %p596_p11, %p595_p4 }
  0x87   : > { %p593_p12 = pneg %p592_p10 }
  0x88   : > { %p599_p5 = por %p598_p6, %p597_p9 }
  0x8a   : > { %p600_p0 = pnand %p599_p5, %p593_p12 }
  0x8c   : > { %603 = shalt.err (!%p600_p0)
}
  0x8d   : > { %412 = dma.vmem_to_hbm [thread:$0]  (%p1033_p13), %s946_s23, 128, %s944_s4, %s266_s21  }
  0x8e PF: > { %p426_p1 = scmp.ge.s32.totalorder %s702_s19, 2  ;;  %s291_s3 = sand.u32 1, %s662_s9  }
  0x8f   : > { %p1034_p7 = scmp.ne.s32.totalorder %s1023_s12, 0  ;;  %s292_s30 = scalar_lea.sflag [#allocation4], %s291_s3 }
  0x91   : > { %p422_p8 = pnand %p426_p1, %p1034_p7 }
  0x93   : > { %657 = dma.done.wait (!%p422_p8), %s292_s30, 128  }
  0x94   : > { %659 = vsyncadd (!%p422_p8), %s292_s30, 4294967168  ;;  %s21_s19 = sadd.s32 1, %s702_s19   ;;  %s1035_s8 = sld [smem:[#allocation11_spill]] }
  0x95   : > { %p18_p2 = scmp.ge.s32.totalorder %s21_s19, 6   ;;  %s1036_s23 = sld [smem:[#allocation12_spill]] }
  0x96   : > { %s1037_s9 = smov %s666_s10  ;;  %s1038_s10 = smov %s670_s11 }
  0x97   : > { %s1039_s11 = smov %s813_s5  ;;  %s1040_s12 = smov %s678_s13 }
  0x98   : > { %s1041_s13 = smov %s682_s14  ;;  %s1042_s14 = smov %s825_s7 }
  0x99   : > { %s1043_s15 = smov %s694_s17  ;;  %s1044_s16 = smov %s698_s18 }
  0x9a   : > { %s1045_s17 = smov %s1035_s8  ;;  %20 = sbr.rel (!%p18_p2) target bundleno = 13 (0xd), region = 90 }
  0x9b   : > { %s1046_s18 = smov %s1036_s23 }
  0xa1   :  { %297 = vsyncpa [#allocation3], 1 }
  0xa2   :  { %299 = vsyncpa [#allocation3 + $0x1], 1 }
  0xa3   :  { %300 = vsyncpa [#allocation6], 1 }
  0xa4   :  { %302 = vsyncpa [#allocation6 + $0x1], 1 }
  0xa5   :  { %303 = vsyncpa [#allocation4], 1 }
  0xa6   :  { %305 = vsyncpa [#allocation4 + $0x1], 1 }

</bundles_post_ra>
